<compile_context>
chip_gen: v7x
topology: tpu7x:2x2x1
jax: 0.10.0
libtpu: 0.0.40
codegen_flags: <defaults>
</compile_context>

<pallas_src>
import functools
import math

import jax
import jax.numpy as jnp
from jax import lax
from jax.experimental import pallas as pl
from jax.experimental.pallas import tpu as pltpu


# ---------------------------------------------------------------------------
# Path A: embedding table resident in VMEM (small / medium tables).
# ---------------------------------------------------------------------------
def _vmem_table_kernel(ids_ref, table_ref, o_ref, gbuf,
                       *, scale, tokens_per_block, fold, d_model):
    """grid = (num_token_blocks,).

    table_ref: whole table, resident in VMEM (constant index_map).
    o_ref / gbuf: lane-dense folded block (tokens_per_block//fold, fold*d_model).
    """
    base = pl.program_id(0) * tokens_per_block
    rows = tokens_per_block // fold

    def gather_row(r, carry):
        # `fold` tokens are packed side by side into one 128-lane-multiple row
        # so the final block store (and HBM writeback DMA) is unmasked.
        for f in range(fold):                      # static -> lane offsets constant
            tok = ids_ref[base + r * fold + f]
            gbuf[pl.ds(r, 1), pl.ds(f * d_model, d_model)] = (
                table_ref[pl.ds(tok, 1), :])
        return carry

    lax.fori_loop(0, rows, gather_row, 0, unroll=min(8, rows))

    # One dense vectorized scale + one lane-dense block store per grid step.
    o_ref[...] = gbuf[...] * scale


# ---------------------------------------------------------------------------
# Path B: large-vocab fallback — table stays in HBM, double-buffered row gather.
# ---------------------------------------------------------------------------
def _hbm_gather_kernel(ids_ref, table_hbm, o_ref, gbuf, sems,
                       *, scale, tokens_per_block):
    tb = tokens_per_block
    blk = pl.program_id(0)
    nblk = pl.num_programs(0)
    slot = blk & 1

    def issue_block(b, dst_slot):
        base = b * tb

        def issue_row(t, carry):
            tok = ids_ref[base + t]
            pltpu.make_async_copy(
                table_hbm.at[pl.ds(tok, 1), :],
                gbuf.at[dst_slot, pl.ds(t, 1), :],
                sems.at[dst_slot],
            ).start()
            return carry

        lax.fori_loop(0, tb, issue_row, 0, unroll=8)

    def wait_block(dst_slot):
        # All tb row copies of the block signal the same per-slot DMA semaphore;
        # a single wait sized for the whole (tb, d_model) slot drains them all
        # (DMA semaphores count bytes: tb x (1, D) rows == one (tb, D) copy).
        pltpu.make_async_copy(
            table_hbm.at[pl.ds(0, tb), :],
            gbuf.at[dst_slot],
            sems.at[dst_slot],
        ).wait()

    # Prime the pipeline with the first block.
    @pl.when(blk == 0)
    def _():
        issue_block(0, 0)

    # Prefetch the NEXT block into the other slot before waiting on this one
    # (ids live in SMEM; read them before the wait to keep sst->sld forwarding).
    @pl.when(blk + 1 < nblk)
    def _():
        issue_block(blk + 1, 1 - slot)

    wait_block(slot)
    o_ref[...] = gbuf[slot] * scale


# ---------------------------------------------------------------------------
# Wrappers
# ---------------------------------------------------------------------------
def _embed_vmem_table(flat_ids, table, scale, tokens_per_block, orig_shape):
    vocab_size, d_model = table.shape
    itemsize = jnp.dtype(table.dtype).itemsize
    n = flat_ids.shape[0]

    # Fold tokens so the stored row is a multiple of 128 lanes (lane-dense).
    fold = 128 // math.gcd(d_model, 128)            # == 1 when d_model % 128 == 0
    unit = 8 * fold                                  # one (8,128) tile worth
    tb = max(unit, (tokens_per_block // unit) * unit)
    tb = min(tb, pl.cdiv(n, unit) * unit)            # don't over-pad tiny inputs
    n_pad = pl.cdiv(n, tb) * tb
    if n_pad != n:
        flat_ids = jnp.concatenate(
            [flat_ids, jnp.zeros((n_pad - n,), jnp.int32)])

    rows = tb // fold
    grid = (n_pad // tb,)

    block_bytes = rows * fold * d_model * itemsize
    d_lane_pad = pl.cdiv(d_model, 128) * 128
    table_vmem_bytes = pl.cdiv(vocab_size, 8) * 8 * d_lane_pad * itemsize
    vmem_limit = max(int(table_vmem_bytes + 3 * block_bytes + (2 << 20)),
                     8 << 20)

    kernel = functools.partial(
        _vmem_table_kernel, scale=scale, tokens_per_block=tb,
        fold=fold, d_model=d_model)

    out_folded = pl.pallas_call(
        kernel,
        out_shape=jax.ShapeDtypeStruct((n_pad // fold, fold * d_model),
                                       table.dtype),
        grid_spec=pltpu.PrefetchScalarGridSpec(
            num_scalar_prefetch=1,                   # token ids -> SMEM
            grid=grid,
            # Whole table, constant block index -> DMA'd to VMEM once and kept
            # resident across all grid steps.
            in_specs=[pl.BlockSpec((vocab_size, d_model),
                                   lambda i, ids: (0, 0))],
            out_specs=pl.BlockSpec((rows, fold * d_model),
                                   lambda i, ids: (i, 0)),
            scratch_shapes=[pltpu.VMEM((rows, fold * d_model), table.dtype)],
        ),
        compiler_params=pltpu.CompilerParams(
            dimension_semantics=("parallel",),       # blocks independent -> 2 TCs
            vmem_limit_bytes=vmem_limit),
        cost_estimate=pl.CostEstimate(
            flops=n_pad * d_model,
            transcendentals=0,
            bytes_accessed=(n_pad * 4
                            + vocab_size * d_model * itemsize
                            + n_pad * d_model * itemsize)),
    )(flat_ids, table)

    out_flat = out_folded.reshape(n_pad, d_model)    # row-major: free un-fold
    return out_flat[:n].reshape(*orig_shape, d_model)


def _embed_hbm_gather(flat_ids, table, scale, tokens_per_block, orig_shape):
    vocab_size, d_model = table.shape
    itemsize = jnp.dtype(table.dtype).itemsize
    n = flat_ids.shape[0]

    tb = max(8, (tokens_per_block // 8) * 8)
    tb = min(tb, pl.cdiv(n, 8) * 8)
    n_pad = pl.cdiv(n, tb) * tb
    if n_pad != n:
        flat_ids = jnp.concatenate(
            [flat_ids, jnp.zeros((n_pad - n,), jnp.int32)])

    gather_bytes = 2 * tb * d_model * itemsize       # double-buffered gather buf
    block_bytes = tb * d_model * itemsize
    vmem_limit = max(int(gather_bytes + 3 * block_bytes + (2 << 20)), 8 << 20)

    kernel = functools.partial(
        _hbm_gather_kernel, scale=scale, tokens_per_block=tb)

    out_flat = pl.pallas_call(
        kernel,
        out_shape=jax.ShapeDtypeStruct((n_pad, d_model), table.dtype),
        grid_spec=pltpu.PrefetchScalarGridSpec(
            num_scalar_prefetch=1,                   # token ids -> SMEM
            grid=(n_pad // tb,),
            in_specs=[pl.BlockSpec(memory_space=pl.ANY)],   # table stays in HBM
            out_specs=pl.BlockSpec((tb, d_model), lambda i, ids: (i, 0)),
            scratch_shapes=[
                pltpu.VMEM((2, tb, d_model), table.dtype),  # 2-slot gather buf
                pltpu.SemaphoreType.DMA((2,)),              # one sem per slot
            ],
        ),
        compiler_params=pltpu.CompilerParams(
            # Cross-step double-buffering is a sequential dependency.
            dimension_semantics=("arbitrary",),
            vmem_limit_bytes=vmem_limit),
        cost_estimate=pl.CostEstimate(
            flops=n_pad * d_model,
            transcendentals=0,
            bytes_accessed=n_pad * 4 + 2 * n_pad * d_model * itemsize),
    )(flat_ids, table)

    return out_flat[:n].reshape(*orig_shape, d_model)


def input_embeddings(ids, table, *, tokens_per_block=256,
                     table_vmem_budget_bytes=None):
    """out[..., :] = table[ids[...], :] * sqrt(d_model)  (nn.Embedding + scale)."""
    vocab_size, d_model = table.shape
    scale = math.sqrt(d_model)
    itemsize = jnp.dtype(table.dtype).itemsize

    orig_shape = ids.shape
    flat_ids = ids.reshape(-1).astype(jnp.int32)

    # VMEM footprint of the table if kept resident (lane-padded to 128).
    d_lane_pad = pl.cdiv(d_model, 128) * 128
    table_vmem_bytes = pl.cdiv(vocab_size, 8) * 8 * d_lane_pad * itemsize

    if table_vmem_budget_bytes is None:
        # Conservative default sized for v7x's 64 MiB VMEM; use the real
        # capacity when queryable (v5e/v6e have 128 MiB physical).
        try:
            cap = pltpu.get_tpu_info().vmem_capacity_bytes
            table_vmem_budget_bytes = min(int(0.6 * cap), 96 << 20)
        except Exception:
            table_vmem_budget_bytes = 40 << 20

    if table_vmem_bytes <= table_vmem_budget_bytes:
        return _embed_vmem_table(flat_ids, table, scale, tokens_per_block,
                                 orig_shape)
    return _embed_hbm_gather(flat_ids, table, scale, tokens_per_block,
                             orig_shape)


if __name__ == "__main__":
    B, S, d_model, vocab_size = 2, 8, 32, 1000

    key = jax.random.PRNGKey(0)
    k_ids, k_tab = jax.random.split(key)
    ids = jax.random.randint(k_ids, (B, S), 0, vocab_size, dtype=jnp.int32)
    table = jax.random.normal(k_tab, (vocab_size, d_model), jnp.float32)

    out = input_embeddings(ids, table)
    out = jax.block_until_ready(out)

    ref = table[ids] * math.sqrt(d_model)
    assert out.shape == (B, S, d_model)
    assert jnp.allclose(out, ref, atol=1e-6, rtol=1e-6)

    print("KERNEL_OK")
</pallas_src>

<mosaic_0001>
module attributes {stable_mosaic.version = 11 : i64} {
  func.func @_vmem_table_kernel(%arg0: i32, %arg1: memref<32xi32, #tpu.memory_space<smem>>, %arg2: memref<1000x32xf32, #tpu.memory_space<vmem>>, %arg3: memref<8x128xf32, #tpu.memory_space<vmem>>, %arg4: memref<8x128xf32, #tpu.memory_space<vmem>>) attributes {dimension_semantics = [#tpu.dimension_semantics<parallel>], iteration_bounds = array<i64: 1>, scalar_prefetch = 1 : i64, scratch_operands = 1 : i64, tpu.core_type = #tpu.core_type<tc>, window_params = [{pipeline_mode = #tpu.pipeline_mode<synchronous>, transform_indices = @transform_0, window_bounds = array<i64: 1000, 32>}, {transform_indices = @transform_1, window_bounds = array<i64: 8, 128>}]} {
    %c32_i32 = arith.constant 32 : i32
    %0 = arith.muli %arg0, %c32_i32 : i32
    %c0_i32 = arith.constant 0 : i32
    %c4_i32 = arith.constant 4 : i32
    %1 = arith.muli %c0_i32, %c4_i32 : i32
    %2 = arith.addi %0, %1 : i32
    %c0_i32_0 = arith.constant 0 : i32
    %3 = arith.addi %2, %c0_i32_0 : i32
    %4 = arith.index_cast %3 : i32 to index
    %5 = memref.load %arg1[%4] : memref<32xi32, #tpu.memory_space<smem>>
    %6 = arith.index_cast %5 : i32 to index
    %c0 = arith.constant 0 : index
    %7 = vector.load %arg2[%6, %c0] : memref<1000x32xf32, #tpu.memory_space<vmem>>, vector<1x32xf32>
    %8 = arith.index_cast %c0_i32 : i32 to index
    %c0_1 = arith.constant 0 : index
    %9 = vector.load %arg4[%8, %c0_1] : memref<8x128xf32, #tpu.memory_space<vmem>>, vector<1x32xf32>
    tpu.vector_store %arg4[%8, %c0_1], %7 {strides = array<i32>} : memref<8x128xf32, #tpu.memory_space<vmem>>, vector<1x32xf32>,
    %c4_i32_2 = arith.constant 4 : i32
    %10 = arith.muli %c0_i32, %c4_i32_2 : i32
    %11 = arith.addi %0, %10 : i32
    %c1_i32 = arith.constant 1 : i32
    %12 = arith.addi %11, %c1_i32 : i32
    %13 = arith.index_cast %12 : i32 to index
    %14 = memref.load %arg1[%13] : memref<32xi32, #tpu.memory_space<smem>>
    %15 = arith.index_cast %14 : i32 to index
    %c0_3 = arith.constant 0 : index
    %16 = vector.load %arg2[%15, %c0_3] : memref<1000x32xf32, #tpu.memory_space<vmem>>, vector<1x32xf32>
    %17 = arith.index_cast %c0_i32 : i32 to index
    %c32 = arith.constant 32 : index
    %18 = vector.load %arg4[%17, %c32] : memref<8x128xf32, #tpu.memory_space<vmem>>, vector<1x32xf32>
    tpu.vector_store %arg4[%17, %c32], %16 {strides = array<i32>} : memref<8x128xf32, #tpu.memory_space<vmem>>, vector<1x32xf32>,
    %c4_i32_4 = arith.constant 4 : i32
    %19 = arith.muli %c0_i32, %c4_i32_4 : i32
    %20 = arith.addi %0, %19 : i32
    %c2_i32 = arith.constant 2 : i32
    %21 = arith.addi %20, %c2_i32 : i32
    %22 = arith.index_cast %21 : i32 to index
    %23 = memref.load %arg1[%22] : memref<32xi32, #tpu.memory_space<smem>>
    %24 = arith.index_cast %23 : i32 to index
    %c0_5 = arith.constant 0 : index
    %25 = vector.load %arg2[%24, %c0_5] : memref<1000x32xf32, #tpu.memory_space<vmem>>, vector<1x32xf32>
    %26 = arith.index_cast %c0_i32 : i32 to index
    %c64 = arith.constant 64 : index
    %27 = vector.load %arg4[%26, %c64] : memref<8x128xf32, #tpu.memory_space<vmem>>, vector<1x32xf32>
    tpu.vector_store %arg4[%26, %c64], %25 {strides = array<i32>} : memref<8x128xf32, #tpu.memory_space<vmem>>, vector<1x32xf32>,
    %c4_i32_6 = arith.constant 4 : i32
    %28 = arith.muli %c0_i32, %c4_i32_6 : i32
    %29 = arith.addi %0, %28 : i32
    %c3_i32 = arith.constant 3 : i32
    %30 = arith.addi %29, %c3_i32 : i32
    %31 = arith.index_cast %30 : i32 to index
    %32 = memref.load %arg1[%31] : memref<32xi32, #tpu.memory_space<smem>>
    %33 = arith.index_cast %32 : i32 to index
    %c0_7 = arith.constant 0 : index
    %34 = vector.load %arg2[%33, %c0_7] : memref<1000x32xf32, #tpu.memory_space<vmem>>, vector<1x32xf32>
    %35 = arith.index_cast %c0_i32 : i32 to index
    %c96 = arith.constant 96 : index
    %36 = vector.load %arg4[%35, %c96] : memref<8x128xf32, #tpu.memory_space<vmem>>, vector<1x32xf32>
    tpu.vector_store %arg4[%35, %c96], %34 {strides = array<i32>} : memref<8x128xf32, #tpu.memory_space<vmem>>, vector<1x32xf32>,
    %c1_i32_8 = arith.constant 1 : i32
    %c4_i32_9 = arith.constant 4 : i32
    %37 = arith.muli %c1_i32_8, %c4_i32_9 : i32
    %38 = arith.addi %0, %37 : i32
    %c0_i32_10 = arith.constant 0 : i32
    %39 = arith.addi %38, %c0_i32_10 : i32
    %40 = arith.index_cast %39 : i32 to index
    %41 = memref.load %arg1[%40] : memref<32xi32, #tpu.memory_space<smem>>
    %42 = arith.index_cast %41 : i32 to index
    %c0_11 = arith.constant 0 : index
    %43 = vector.load %arg2[%42, %c0_11] : memref<1000x32xf32, #tpu.memory_space<vmem>>, vector<1x32xf32>
    %44 = arith.index_cast %c1_i32_8 : i32 to index
    %c0_12 = arith.constant 0 : index
    %45 = vector.load %arg4[%44, %c0_12] : memref<8x128xf32, #tpu.memory_space<vmem>>, vector<1x32xf32>
    tpu.vector_store %arg4[%44, %c0_12], %43 {strides = array<i32>} : memref<8x128xf32, #tpu.memory_space<vmem>>, vector<1x32xf32>,
    %c4_i32_13 = arith.constant 4 : i32
    %46 = arith.muli %c1_i32_8, %c4_i32_13 : i32
    %47 = arith.addi %0, %46 : i32
    %c1_i32_14 = arith.constant 1 : i32
    %48 = arith.addi %47, %c1_i32_14 : i32
    %49 = arith.index_cast %48 : i32 to index
    %50 = memref.load %arg1[%49] : memref<32xi32, #tpu.memory_space<smem>>
    %51 = arith.index_cast %50 : i32 to index
    %c0_15 = arith.constant 0 : index
    %52 = vector.load %arg2[%51, %c0_15] : memref<1000x32xf32, #tpu.memory_space<vmem>>, vector<1x32xf32>
    %53 = arith.index_cast %c1_i32_8 : i32 to index
    %c32_16 = arith.constant 32 : index
    %54 = vector.load %arg4[%53, %c32_16] : memref<8x128xf32, #tpu.memory_space<vmem>>, vector<1x32xf32>
    tpu.vector_store %arg4[%53, %c32_16], %52 {strides = array<i32>} : memref<8x128xf32, #tpu.memory_space<vmem>>, vector<1x32xf32>,
    %c4_i32_17 = arith.constant 4 : i32
    %55 = arith.muli %c1_i32_8, %c4_i32_17 : i32
    %56 = arith.addi %0, %55 : i32
    %c2_i32_18 = arith.constant 2 : i32
    %57 = arith.addi %56, %c2_i32_18 : i32
    %58 = arith.index_cast %57 : i32 to index
    %59 = memref.load %arg1[%58] : memref<32xi32, #tpu.memory_space<smem>>
    %60 = arith.index_cast %59 : i32 to index
    %c0_19 = arith.constant 0 : index
    %61 = vector.load %arg2[%60, %c0_19] : memref<1000x32xf32, #tpu.memory_space<vmem>>, vector<1x32xf32>
    %62 = arith.index_cast %c1_i32_8 : i32 to index
    %c64_20 = arith.constant 64 : index
    %63 = vector.load %arg4[%62, %c64_20] : memref<8x128xf32, #tpu.memory_space<vmem>>, vector<1x32xf32>
    tpu.vector_store %arg4[%62, %c64_20], %61 {strides = array<i32>} : memref<8x128xf32, #tpu.memory_space<vmem>>, vector<1x32xf32>,
    %c4_i32_21 = arith.constant 4 : i32
    %64 = arith.muli %c1_i32_8, %c4_i32_21 : i32
    %65 = arith.addi %0, %64 : i32
    %c3_i32_22 = arith.constant 3 : i32
    %66 = arith.addi %65, %c3_i32_22 : i32
    %67 = arith.index_cast %66 : i32 to index
    %68 = memref.load %arg1[%67] : memref<32xi32, #tpu.memory_space<smem>>
    %69 = arith.index_cast %68 : i32 to index
    %c0_23 = arith.constant 0 : index
    %70 = vector.load %arg2[%69, %c0_23] : memref<1000x32xf32, #tpu.memory_space<vmem>>, vector<1x32xf32>
    %71 = arith.index_cast %c1_i32_8 : i32 to index
    %c96_24 = arith.constant 96 : index
    %72 = vector.load %arg4[%71, %c96_24] : memref<8x128xf32, #tpu.memory_space<vmem>>, vector<1x32xf32>
    tpu.vector_store %arg4[%71, %c96_24], %70 {strides = array<i32>} : memref<8x128xf32, #tpu.memory_space<vmem>>, vector<1x32xf32>,
    %c2_i32_25 = arith.constant 2 : i32
    %c4_i32_26 = arith.constant 4 : i32
    %73 = arith.muli %c2_i32_25, %c4_i32_26 : i32
    %74 = arith.addi %0, %73 : i32
    %c0_i32_27 = arith.constant 0 : i32
    %75 = arith.addi %74, %c0_i32_27 : i32
    %76 = arith.index_cast %75 : i32 to index
    %77 = memref.load %arg1[%76] : memref<32xi32, #tpu.memory_space<smem>>
    %78 = arith.index_cast %77 : i32 to index
    %c0_28 = arith.constant 0 : index
    %79 = vector.load %arg2[%78, %c0_28] : memref<1000x32xf32, #tpu.memory_space<vmem>>, vector<1x32xf32>
    %80 = arith.index_cast %c2_i32_25 : i32 to index
    %c0_29 = arith.constant 0 : index
    %81 = vector.load %arg4[%80, %c0_29] : memref<8x128xf32, #tpu.memory_space<vmem>>, vector<1x32xf32>
    tpu.vector_store %arg4[%80, %c0_29], %79 {strides = array<i32>} : memref<8x128xf32, #tpu.memory_space<vmem>>, vector<1x32xf32>,
    %c4_i32_30 = arith.constant 4 : i32
    %82 = arith.muli %c2_i32_25, %c4_i32_30 : i32
    %83 = arith.addi %0, %82 : i32
    %c1_i32_31 = arith.constant 1 : i32
    %84 = arith.addi %83, %c1_i32_31 : i32
    %85 = arith.index_cast %84 : i32 to index
    %86 = memref.load %arg1[%85] : memref<32xi32, #tpu.memory_space<smem>>
    %87 = arith.index_cast %86 : i32 to index
    %c0_32 = arith.constant 0 : index
    %88 = vector.load %arg2[%87, %c0_32] : memref<1000x32xf32, #tpu.memory_space<vmem>>, vector<1x32xf32>
    %89 = arith.index_cast %c2_i32_25 : i32 to index
    %c32_33 = arith.constant 32 : index
    %90 = vector.load %arg4[%89, %c32_33] : memref<8x128xf32, #tpu.memory_space<vmem>>, vector<1x32xf32>
    tpu.vector_store %arg4[%89, %c32_33], %88 {strides = array<i32>} : memref<8x128xf32, #tpu.memory_space<vmem>>, vector<1x32xf32>,
    %c4_i32_34 = arith.constant 4 : i32
    %91 = arith.muli %c2_i32_25, %c4_i32_34 : i32
    %92 = arith.addi %0, %91 : i32
    %c2_i32_35 = arith.constant 2 : i32
    %93 = arith.addi %92, %c2_i32_35 : i32
    %94 = arith.index_cast %93 : i32 to index
    %95 = memref.load %arg1[%94] : memref<32xi32, #tpu.memory_space<smem>>
    %96 = arith.index_cast %95 : i32 to index
    %c0_36 = arith.constant 0 : index
    %97 = vector.load %arg2[%96, %c0_36] : memref<1000x32xf32, #tpu.memory_space<vmem>>, vector<1x32xf32>
    %98 = arith.index_cast %c2_i32_25 : i32 to index
    %c64_37 = arith.constant 64 : index
    %99 = vector.load %arg4[%98, %c64_37] : memref<8x128xf32, #tpu.memory_space<vmem>>, vector<1x32xf32>
    tpu.vector_store %arg4[%98, %c64_37], %97 {strides = array<i32>} : memref<8x128xf32, #tpu.memory_space<vmem>>, vector<1x32xf32>,
    %c4_i32_38 = arith.constant 4 : i32
    %100 = arith.muli %c2_i32_25, %c4_i32_38 : i32
    %101 = arith.addi %0, %100 : i32
    %c3_i32_39 = arith.constant 3 : i32
    %102 = arith.addi %101, %c3_i32_39 : i32
    %103 = arith.index_cast %102 : i32 to index
    %104 = memref.load %arg1[%103] : memref<32xi32, #tpu.memory_space<smem>>
    %105 = arith.index_cast %104 : i32 to index
    %c0_40 = arith.constant 0 : index
    %106 = vector.load %arg2[%105, %c0_40] : memref<1000x32xf32, #tpu.memory_space<vmem>>, vector<1x32xf32>
    %107 = arith.index_cast %c2_i32_25 : i32 to index
    %c96_41 = arith.constant 96 : index
    %108 = vector.load %arg4[%107, %c96_41] : memref<8x128xf32, #tpu.memory_space<vmem>>, vector<1x32xf32>
    tpu.vector_store %arg4[%107, %c96_41], %106 {strides = array<i32>} : memref<8x128xf32, #tpu.memory_space<vmem>>, vector<1x32xf32>,
    %c3_i32_42 = arith.constant 3 : i32
    %c4_i32_43 = arith.constant 4 : i32
    %109 = arith.muli %c3_i32_42, %c4_i32_43 : i32
    %110 = arith.addi %0, %109 : i32
    %c0_i32_44 = arith.constant 0 : i32
    %111 = arith.addi %110, %c0_i32_44 : i32
    %112 = arith.index_cast %111 : i32 to index
    %113 = memref.load %arg1[%112] : memref<32xi32, #tpu.memory_space<smem>>
    %114 = arith.index_cast %113 : i32 to index
    %c0_45 = arith.constant 0 : index
    %115 = vector.load %arg2[%114, %c0_45] : memref<1000x32xf32, #tpu.memory_space<vmem>>, vector<1x32xf32>
    %116 = arith.index_cast %c3_i32_42 : i32 to index
    %c0_46 = arith.constant 0 : index
    %117 = vector.load %arg4[%116, %c0_46] : memref<8x128xf32, #tpu.memory_space<vmem>>, vector<1x32xf32>
    tpu.vector_store %arg4[%116, %c0_46], %115 {strides = array<i32>} : memref<8x128xf32, #tpu.memory_space<vmem>>, vector<1x32xf32>,
    %c4_i32_47 = arith.constant 4 : i32
    %118 = arith.muli %c3_i32_42, %c4_i32_47 : i32
    %119 = arith.addi %0, %118 : i32
    %c1_i32_48 = arith.constant 1 : i32
    %120 = arith.addi %119, %c1_i32_48 : i32
    %121 = arith.index_cast %120 : i32 to index
    %122 = memref.load %arg1[%121] : memref<32xi32, #tpu.memory_space<smem>>
    %123 = arith.index_cast %122 : i32 to index
    %c0_49 = arith.constant 0 : index
    %124 = vector.load %arg2[%123, %c0_49] : memref<1000x32xf32, #tpu.memory_space<vmem>>, vector<1x32xf32>
    %125 = arith.index_cast %c3_i32_42 : i32 to index
    %c32_50 = arith.constant 32 : index
    %126 = vector.load %arg4[%125, %c32_50] : memref<8x128xf32, #tpu.memory_space<vmem>>, vector<1x32xf32>
    tpu.vector_store %arg4[%125, %c32_50], %124 {strides = array<i32>} : memref<8x128xf32, #tpu.memory_space<vmem>>, vector<1x32xf32>,
    %c4_i32_51 = arith.constant 4 : i32
    %127 = arith.muli %c3_i32_42, %c4_i32_51 : i32
    %128 = arith.addi %0, %127 : i32
    %c2_i32_52 = arith.constant 2 : i32
    %129 = arith.addi %128, %c2_i32_52 : i32
    %130 = arith.index_cast %129 : i32 to index
    %131 = memref.load %arg1[%130] : memref<32xi32, #tpu.memory_space<smem>>
    %132 = arith.index_cast %131 : i32 to index
    %c0_53 = arith.constant 0 : index
    %133 = vector.load %arg2[%132, %c0_53] : memref<1000x32xf32, #tpu.memory_space<vmem>>, vector<1x32xf32>
    %134 = arith.index_cast %c3_i32_42 : i32 to index
    %c64_54 = arith.constant 64 : index
    %135 = vector.load %arg4[%134, %c64_54] : memref<8x128xf32, #tpu.memory_space<vmem>>, vector<1x32xf32>
    tpu.vector_store %arg4[%134, %c64_54], %133 {strides = array<i32>} : memref<8x128xf32, #tpu.memory_space<vmem>>, vector<1x32xf32>,
    %c4_i32_55 = arith.constant 4 : i32
    %136 = arith.muli %c3_i32_42, %c4_i32_55 : i32
    %137 = arith.addi %0, %136 : i32
    %c3_i32_56 = arith.constant 3 : i32
    %138 = arith.addi %137, %c3_i32_56 : i32
    %139 = arith.index_cast %138 : i32 to index
    %140 = memref.load %arg1[%139] : memref<32xi32, #tpu.memory_space<smem>>
    %141 = arith.index_cast %140 : i32 to index
    %c0_57 = arith.constant 0 : index
    %142 = vector.load %arg2[%141, %c0_57] : memref<1000x32xf32, #tpu.memory_space<vmem>>, vector<1x32xf32>
    %143 = arith.index_cast %c3_i32_42 : i32 to index
    %c96_58 = arith.constant 96 : index
    %144 = vector.load %arg4[%143, %c96_58] : memref<8x128xf32, #tpu.memory_space<vmem>>, vector<1x32xf32>
    tpu.vector_store %arg4[%143, %c96_58], %142 {strides = array<i32>} : memref<8x128xf32, #tpu.memory_space<vmem>>, vector<1x32xf32>,
    %c4_i32_59 = arith.constant 4 : i32
    %c4_i32_60 = arith.constant 4 : i32
    %145 = arith.muli %c4_i32_59, %c4_i32_60 : i32
    %146 = arith.addi %0, %145 : i32
    %c0_i32_61 = arith.constant 0 : i32
    %147 = arith.addi %146, %c0_i32_61 : i32
    %148 = arith.index_cast %147 : i32 to index
    %149 = memref.load %arg1[%148] : memref<32xi32, #tpu.memory_space<smem>>
    %150 = arith.index_cast %149 : i32 to index
    %c0_62 = arith.constant 0 : index
    %151 = vector.load %arg2[%150, %c0_62] : memref<1000x32xf32, #tpu.memory_space<vmem>>, vector<1x32xf32>
    %152 = arith.index_cast %c4_i32_59 : i32 to index
    %c0_63 = arith.constant 0 : index
    %153 = vector.load %arg4[%152, %c0_63] : memref<8x128xf32, #tpu.memory_space<vmem>>, vector<1x32xf32>
    tpu.vector_store %arg4[%152, %c0_63], %151 {strides = array<i32>} : memref<8x128xf32, #tpu.memory_space<vmem>>, vector<1x32xf32>,
    %c4_i32_64 = arith.constant 4 : i32
    %154 = arith.muli %c4_i32_59, %c4_i32_64 : i32
    %155 = arith.addi %0, %154 : i32
    %c1_i32_65 = arith.constant 1 : i32
    %156 = arith.addi %155, %c1_i32_65 : i32
    %157 = arith.index_cast %156 : i32 to index
    %158 = memref.load %arg1[%157] : memref<32xi32, #tpu.memory_space<smem>>
    %159 = arith.index_cast %158 : i32 to index
    %c0_66 = arith.constant 0 : index
    %160 = vector.load %arg2[%159, %c0_66] : memref<1000x32xf32, #tpu.memory_space<vmem>>, vector<1x32xf32>
    %161 = arith.index_cast %c4_i32_59 : i32 to index
    %c32_67 = arith.constant 32 : index
    %162 = vector.load %arg4[%161, %c32_67] : memref<8x128xf32, #tpu.memory_space<vmem>>, vector<1x32xf32>
    tpu.vector_store %arg4[%161, %c32_67], %160 {strides = array<i32>} : memref<8x128xf32, #tpu.memory_space<vmem>>, vector<1x32xf32>,
    %c4_i32_68 = arith.constant 4 : i32
    %163 = arith.muli %c4_i32_59, %c4_i32_68 : i32
    %164 = arith.addi %0, %163 : i32
    %c2_i32_69 = arith.constant 2 : i32
    %165 = arith.addi %164, %c2_i32_69 : i32
    %166 = arith.index_cast %165 : i32 to index
    %167 = memref.load %arg1[%166] : memref<32xi32, #tpu.memory_space<smem>>
    %168 = arith.index_cast %167 : i32 to index
    %c0_70 = arith.constant 0 : index
    %169 = vector.load %arg2[%168, %c0_70] : memref<1000x32xf32, #tpu.memory_space<vmem>>, vector<1x32xf32>
    %170 = arith.index_cast %c4_i32_59 : i32 to index
    %c64_71 = arith.constant 64 : index
    %171 = vector.load %arg4[%170, %c64_71] : memref<8x128xf32, #tpu.memory_space<vmem>>, vector<1x32xf32>
    tpu.vector_store %arg4[%170, %c64_71], %169 {strides = array<i32>} : memref<8x128xf32, #tpu.memory_space<vmem>>, vector<1x32xf32>,
    %c4_i32_72 = arith.constant 4 : i32
    %172 = arith.muli %c4_i32_59, %c4_i32_72 : i32
    %173 = arith.addi %0, %172 : i32
    %c3_i32_73 = arith.constant 3 : i32
    %174 = arith.addi %173, %c3_i32_73 : i32
    %175 = arith.index_cast %174 : i32 to index
    %176 = memref.load %arg1[%175] : memref<32xi32, #tpu.memory_space<smem>>
    %177 = arith.index_cast %176 : i32 to index
    %c0_74 = arith.constant 0 : index
    %178 = vector.load %arg2[%177, %c0_74] : memref<1000x32xf32, #tpu.memory_space<vmem>>, vector<1x32xf32>
    %179 = arith.index_cast %c4_i32_59 : i32 to index
    %c96_75 = arith.constant 96 : index
    %180 = vector.load %arg4[%179, %c96_75] : memref<8x128xf32, #tpu.memory_space<vmem>>, vector<1x32xf32>
    tpu.vector_store %arg4[%179, %c96_75], %178 {strides = array<i32>} : memref<8x128xf32, #tpu.memory_space<vmem>>, vector<1x32xf32>,
    %c5_i32 = arith.constant 5 : i32
    %c4_i32_76 = arith.constant 4 : i32
    %181 = arith.muli %c5_i32, %c4_i32_76 : i32
    %182 = arith.addi %0, %181 : i32
    %c0_i32_77 = arith.constant 0 : i32
    %183 = arith.addi %182, %c0_i32_77 : i32
    %184 = arith.index_cast %183 : i32 to index
    %185 = memref.load %arg1[%184] : memref<32xi32, #tpu.memory_space<smem>>
    %186 = arith.index_cast %185 : i32 to index
    %c0_78 = arith.constant 0 : index
    %187 = vector.load %arg2[%186, %c0_78] : memref<1000x32xf32, #tpu.memory_space<vmem>>, vector<1x32xf32>
    %188 = arith.index_cast %c5_i32 : i32 to index
    %c0_79 = arith.constant 0 : index
    %189 = vector.load %arg4[%188, %c0_79] : memref<8x128xf32, #tpu.memory_space<vmem>>, vector<1x32xf32>
    tpu.vector_store %arg4[%188, %c0_79], %187 {strides = array<i32>} : memref<8x128xf32, #tpu.memory_space<vmem>>, vector<1x32xf32>,
    %c4_i32_80 = arith.constant 4 : i32
    %190 = arith.muli %c5_i32, %c4_i32_80 : i32
    %191 = arith.addi %0, %190 : i32
    %c1_i32_81 = arith.constant 1 : i32
    %192 = arith.addi %191, %c1_i32_81 : i32
    %193 = arith.index_cast %192 : i32 to index
    %194 = memref.load %arg1[%193] : memref<32xi32, #tpu.memory_space<smem>>
    %195 = arith.index_cast %194 : i32 to index
    %c0_82 = arith.constant 0 : index
    %196 = vector.load %arg2[%195, %c0_82] : memref<1000x32xf32, #tpu.memory_space<vmem>>, vector<1x32xf32>
    %197 = arith.index_cast %c5_i32 : i32 to index
    %c32_83 = arith.constant 32 : index
    %198 = vector.load %arg4[%197, %c32_83] : memref<8x128xf32, #tpu.memory_space<vmem>>, vector<1x32xf32>
    tpu.vector_store %arg4[%197, %c32_83], %196 {strides = array<i32>} : memref<8x128xf32, #tpu.memory_space<vmem>>, vector<1x32xf32>,
    %c4_i32_84 = arith.constant 4 : i32
    %199 = arith.muli %c5_i32, %c4_i32_84 : i32
    %200 = arith.addi %0, %199 : i32
    %c2_i32_85 = arith.constant 2 : i32
    %201 = arith.addi %200, %c2_i32_85 : i32
    %202 = arith.index_cast %201 : i32 to index
    %203 = memref.load %arg1[%202] : memref<32xi32, #tpu.memory_space<smem>>
    %204 = arith.index_cast %203 : i32 to index
    %c0_86 = arith.constant 0 : index
    %205 = vector.load %arg2[%204, %c0_86] : memref<1000x32xf32, #tpu.memory_space<vmem>>, vector<1x32xf32>
    %206 = arith.index_cast %c5_i32 : i32 to index
    %c64_87 = arith.constant 64 : index
    %207 = vector.load %arg4[%206, %c64_87] : memref<8x128xf32, #tpu.memory_space<vmem>>, vector<1x32xf32>
    tpu.vector_store %arg4[%206, %c64_87], %205 {strides = array<i32>} : memref<8x128xf32, #tpu.memory_space<vmem>>, vector<1x32xf32>,
    %c4_i32_88 = arith.constant 4 : i32
    %208 = arith.muli %c5_i32, %c4_i32_88 : i32
    %209 = arith.addi %0, %208 : i32
    %c3_i32_89 = arith.constant 3 : i32
    %210 = arith.addi %209, %c3_i32_89 : i32
    %211 = arith.index_cast %210 : i32 to index
    %212 = memref.load %arg1[%211] : memref<32xi32, #tpu.memory_space<smem>>
    %213 = arith.index_cast %212 : i32 to index
    %c0_90 = arith.constant 0 : index
    %214 = vector.load %arg2[%213, %c0_90] : memref<1000x32xf32, #tpu.memory_space<vmem>>, vector<1x32xf32>
    %215 = arith.index_cast %c5_i32 : i32 to index
    %c96_91 = arith.constant 96 : index
    %216 = vector.load %arg4[%215, %c96_91] : memref<8x128xf32, #tpu.memory_space<vmem>>, vector<1x32xf32>
    tpu.vector_store %arg4[%215, %c96_91], %214 {strides = array<i32>} : memref<8x128xf32, #tpu.memory_space<vmem>>, vector<1x32xf32>,
    %c6_i32 = arith.constant 6 : i32
    %c4_i32_92 = arith.constant 4 : i32
    %217 = arith.muli %c6_i32, %c4_i32_92 : i32
    %218 = arith.addi %0, %217 : i32
    %c0_i32_93 = arith.constant 0 : i32
    %219 = arith.addi %218, %c0_i32_93 : i32
    %220 = arith.index_cast %219 : i32 to index
    %221 = memref.load %arg1[%220] : memref<32xi32, #tpu.memory_space<smem>>
    %222 = arith.index_cast %221 : i32 to index
    %c0_94 = arith.constant 0 : index
    %223 = vector.load %arg2[%222, %c0_94] : memref<1000x32xf32, #tpu.memory_space<vmem>>, vector<1x32xf32>
    %224 = arith.index_cast %c6_i32 : i32 to index
    %c0_95 = arith.constant 0 : index
    %225 = vector.load %arg4[%224, %c0_95] : memref<8x128xf32, #tpu.memory_space<vmem>>, vector<1x32xf32>
    tpu.vector_store %arg4[%224, %c0_95], %223 {strides = array<i32>} : memref<8x128xf32, #tpu.memory_space<vmem>>, vector<1x32xf32>,
    %c4_i32_96 = arith.constant 4 : i32
    %226 = arith.muli %c6_i32, %c4_i32_96 : i32
    %227 = arith.addi %0, %226 : i32
    %c1_i32_97 = arith.constant 1 : i32
    %228 = arith.addi %227, %c1_i32_97 : i32
    %229 = arith.index_cast %228 : i32 to index
    %230 = memref.load %arg1[%229] : memref<32xi32, #tpu.memory_space<smem>>
    %231 = arith.index_cast %230 : i32 to index
    %c0_98 = arith.constant 0 : index
    %232 = vector.load %arg2[%231, %c0_98] : memref<1000x32xf32, #tpu.memory_space<vmem>>, vector<1x32xf32>
    %233 = arith.index_cast %c6_i32 : i32 to index
    %c32_99 = arith.constant 32 : index
    %234 = vector.load %arg4[%233, %c32_99] : memref<8x128xf32, #tpu.memory_space<vmem>>, vector<1x32xf32>
    tpu.vector_store %arg4[%233, %c32_99], %232 {strides = array<i32>} : memref<8x128xf32, #tpu.memory_space<vmem>>, vector<1x32xf32>,
    %c4_i32_100 = arith.constant 4 : i32
    %235 = arith.muli %c6_i32, %c4_i32_100 : i32
    %236 = arith.addi %0, %235 : i32
    %c2_i32_101 = arith.constant 2 : i32
    %237 = arith.addi %236, %c2_i32_101 : i32
    %238 = arith.index_cast %237 : i32 to index
    %239 = memref.load %arg1[%238] : memref<32xi32, #tpu.memory_space<smem>>
    %240 = arith.index_cast %239 : i32 to index
    %c0_102 = arith.constant 0 : index
    %241 = vector.load %arg2[%240, %c0_102] : memref<1000x32xf32, #tpu.memory_space<vmem>>, vector<1x32xf32>
    %242 = arith.index_cast %c6_i32 : i32 to index
    %c64_103 = arith.constant 64 : index
    %243 = vector.load %arg4[%242, %c64_103] : memref<8x128xf32, #tpu.memory_space<vmem>>, vector<1x32xf32>
    tpu.vector_store %arg4[%242, %c64_103], %241 {strides = array<i32>} : memref<8x128xf32, #tpu.memory_space<vmem>>, vector<1x32xf32>,
    %c4_i32_104 = arith.constant 4 : i32
    %244 = arith.muli %c6_i32, %c4_i32_104 : i32
    %245 = arith.addi %0, %244 : i32
    %c3_i32_105 = arith.constant 3 : i32
    %246 = arith.addi %245, %c3_i32_105 : i32
    %247 = arith.index_cast %246 : i32 to index
    %248 = memref.load %arg1[%247] : memref<32xi32, #tpu.memory_space<smem>>
    %249 = arith.index_cast %248 : i32 to index
    %c0_106 = arith.constant 0 : index
    %250 = vector.load %arg2[%249, %c0_106] : memref<1000x32xf32, #tpu.memory_space<vmem>>, vector<1x32xf32>
    %251 = arith.index_cast %c6_i32 : i32 to index
    %c96_107 = arith.constant 96 : index
    %252 = vector.load %arg4[%251, %c96_107] : memref<8x128xf32, #tpu.memory_space<vmem>>, vector<1x32xf32>
    tpu.vector_store %arg4[%251, %c96_107], %250 {strides = array<i32>} : memref<8x128xf32, #tpu.memory_space<vmem>>, vector<1x32xf32>,
    %c7_i32 = arith.constant 7 : i32
    %c4_i32_108 = arith.constant 4 : i32
    %253 = arith.muli %c7_i32, %c4_i32_108 : i32
    %254 = arith.addi %0, %253 : i32
    %c0_i32_109 = arith.constant 0 : i32
    %255 = arith.addi %254, %c0_i32_109 : i32
    %256 = arith.index_cast %255 : i32 to index
    %257 = memref.load %arg1[%256] : memref<32xi32, #tpu.memory_space<smem>>
    %258 = arith.index_cast %257 : i32 to index
    %c0_110 = arith.constant 0 : index
    %259 = vector.load %arg2[%258, %c0_110] : memref<1000x32xf32, #tpu.memory_space<vmem>>, vector<1x32xf32>
    %260 = arith.index_cast %c7_i32 : i32 to index
    %c0_111 = arith.constant 0 : index
    %261 = vector.load %arg4[%260, %c0_111] : memref<8x128xf32, #tpu.memory_space<vmem>>, vector<1x32xf32>
    tpu.vector_store %arg4[%260, %c0_111], %259 {strides = array<i32>} : memref<8x128xf32, #tpu.memory_space<vmem>>, vector<1x32xf32>,
    %c4_i32_112 = arith.constant 4 : i32
    %262 = arith.muli %c7_i32, %c4_i32_112 : i32
    %263 = arith.addi %0, %262 : i32
    %c1_i32_113 = arith.constant 1 : i32
    %264 = arith.addi %263, %c1_i32_113 : i32
    %265 = arith.index_cast %264 : i32 to index
    %266 = memref.load %arg1[%265] : memref<32xi32, #tpu.memory_space<smem>>
    %267 = arith.index_cast %266 : i32 to index
    %c0_114 = arith.constant 0 : index
    %268 = vector.load %arg2[%267, %c0_114] : memref<1000x32xf32, #tpu.memory_space<vmem>>, vector<1x32xf32>
    %269 = arith.index_cast %c7_i32 : i32 to index
    %c32_115 = arith.constant 32 : index
    %270 = vector.load %arg4[%269, %c32_115] : memref<8x128xf32, #tpu.memory_space<vmem>>, vector<1x32xf32>
    tpu.vector_store %arg4[%269, %c32_115], %268 {strides = array<i32>} : memref<8x128xf32, #tpu.memory_space<vmem>>, vector<1x32xf32>,
    %c4_i32_116 = arith.constant 4 : i32
    %271 = arith.muli %c7_i32, %c4_i32_116 : i32
    %272 = arith.addi %0, %271 : i32
    %c2_i32_117 = arith.constant 2 : i32
    %273 = arith.addi %272, %c2_i32_117 : i32
    %274 = arith.index_cast %273 : i32 to index
    %275 = memref.load %arg1[%274] : memref<32xi32, #tpu.memory_space<smem>>
    %276 = arith.index_cast %275 : i32 to index
    %c0_118 = arith.constant 0 : index
    %277 = vector.load %arg2[%276, %c0_118] : memref<1000x32xf32, #tpu.memory_space<vmem>>, vector<1x32xf32>
    %278 = arith.index_cast %c7_i32 : i32 to index
    %c64_119 = arith.constant 64 : index
    %279 = vector.load %arg4[%278, %c64_119] : memref<8x128xf32, #tpu.memory_space<vmem>>, vector<1x32xf32>
    tpu.vector_store %arg4[%278, %c64_119], %277 {strides = array<i32>} : memref<8x128xf32, #tpu.memory_space<vmem>>, vector<1x32xf32>,
    %c4_i32_120 = arith.constant 4 : i32
    %280 = arith.muli %c7_i32, %c4_i32_120 : i32
    %281 = arith.addi %0, %280 : i32
    %c3_i32_121 = arith.constant 3 : i32
    %282 = arith.addi %281, %c3_i32_121 : i32
    %283 = arith.index_cast %282 : i32 to index
    %284 = memref.load %arg1[%283] : memref<32xi32, #tpu.memory_space<smem>>
    %285 = arith.index_cast %284 : i32 to index
    %c0_122 = arith.constant 0 : index
    %286 = vector.load %arg2[%285, %c0_122] : memref<1000x32xf32, #tpu.memory_space<vmem>>, vector<1x32xf32>
    %287 = arith.index_cast %c7_i32 : i32 to index
    %c96_123 = arith.constant 96 : index
    %288 = vector.load %arg4[%287, %c96_123] : memref<8x128xf32, #tpu.memory_space<vmem>>, vector<1x32xf32>
    tpu.vector_store %arg4[%287, %c96_123], %286 {strides = array<i32>} : memref<8x128xf32, #tpu.memory_space<vmem>>, vector<1x32xf32>,
    %c8_i32 = arith.constant 8 : i32
    %c0_124 = arith.constant 0 : index
    %c0_125 = arith.constant 0 : index
    %289 = vector.load %arg4[%c0_124, %c0_125] : memref<8x128xf32, #tpu.memory_space<vmem>>, vector<8x128xf32>
    %cst = arith.constant 5.65685415 : f32
    %290 = vector.broadcast %cst : f32 to vector<8x128xf32>
    %291 = arith.mulf %289, %290 : vector<8x128xf32>
    %c0_126 = arith.constant 0 : index
    %c0_127 = arith.constant 0 : index
    %292 = vector.load %arg3[%c0_126, %c0_127] : memref<8x128xf32, #tpu.memory_space<vmem>>, vector<8x128xf32>
    tpu.vector_store %arg3[%c0_126, %c0_127], %291 {strides = array<i32>} : memref<8x128xf32, #tpu.memory_space<vmem>>, vector<8x128xf32>,
    return
  }
  func.func @transform_0(%arg0: i32, %arg1: memref<32xi32, #tpu.memory_space<smem>>) -> (i32, i32) {
    %c0_i32 = arith.constant 0 : i32
    %c0_i32_0 = arith.constant 0 : i32
    %c0_i32_1 = arith.constant 0 : i32
    return %c0_i32, %c0_i32_0 : i32, i32
  }
  func.func @transform_1(%arg0: i32, %arg1: memref<32xi32, #tpu.memory_space<smem>>) -> (i32, i32) {
    %c0_i32 = arith.constant 0 : i32
    %c0_i32_0 = arith.constant 0 : i32
    return %arg0, %c0_i32 : i32, i32
  }
}

</mosaic_0001>

<bundles_post_ra>
// kernel: tpu_custom_call.1
= control target key start
LH: loop header
LB: loop body
LE: loop exit
PB: predicated region body
PF: predicated region fallthrough
CT: control target
= control target key end

     0   :  { %s626_s0 = inlined_call_operand.vmem [shape: s32[32], index: 0, kind: input, shape index: {}]   ;;  %s627_s1 = inlined_call_operand.vmem [shape: f32[1000,32], index: 1, kind: input, shape index: {}]   ;;  %s628_s2 = inlined_call_operand.hbm [shape: f32[8,128], index: 2, kind: output, shape index: {}]  }
   0x1   :  { %s7_s11 = sshll.u32 %s626_s0, 4  ;;  %s8_s11 = int_to_ptr.vmem [resolvable:$true] %s7_s11 }
   0x2   :  { %s361_s12 = scalar_lea.vmem %s8_s11, 16  ;;  %p366_p1 = scmp.lt.s32.totalorder %s8_s11, %s8_s11 }
   0x3   :  { %p362_p0 = scmp.ne.s32.totalorder %s8_s11, %s361_s12  ;;  %p367_p2 = scmp.lt.s32.totalorder %s361_s12, %s361_s12 }
   0x5   :  { %p368_p3 = por %p367_p2, %p366_p1 }
   0x7   :  { %p369_p4 = pnand %p368_p3, %p362_p0 }
   0x9   :  { %372 = shalt.err (!%p369_p4)  }
   0xa   :  { %s399_s13 = smov [#allocation4]  }
   0xb   :  { %10 = dma.vmem_to_smem %s8_s11, 16, %s399_s13, [#allocation3] }
   0xc   :  { %395 = dma.done.wait [#allocation3], 16 }
   0xd   :  { %396 = vsyncadd [#allocation3], 4294967280 }
   0xe   :  { %12 = sfence }
   0xf   :  { %s333_s14 = sld [smem:[#allocation4 + $0x9]]  ;;  %s337_s16 = sld [smem:[#allocation4 + $0xd]] }
  0x10   :  { %s325_s15 = sld [smem:[#allocation4 + $0x1]] }
  0x11   :  { %13 = vsyncpa [#allocation6], 0  ;;  %s329_s17 = sld [smem:[#allocation4 + $0x5]]  ;;  %s341_s0 = sld [smem:[#allocation4 + $0x11]]  ;;  %vm20_vm0 = vcmask 253952   ;;  %vm30_vm1 = vcmask 516352  }
  0x12   :  { %s345_s18 = sld [smem:[#allocation4 + $0x15]]  ;;  %s349_s23 = sld [smem:[#allocation4 + $0x19]]  ;;  %vm40_vm2 = vcmask 778752   ;;  %vm50_vm3 = vcmask 1041152  }
  0x13   :  { %s353_s19 = sld [smem:[#allocation4 + $0x1d]]  ;;  %s400_s30 = smov 32  }
  0x14   :  { %s330_s9 = sld [smem:[#allocation4 + $0x6]]  ;;  %s326_s13 = sld [smem:[#allocation4 + $0x2]] }
  0x15   :  { %s91_s22 = scalar_lea.vmem %s627_s1, %s333_s14  ;;  %s123_s29 = scalar_lea.vmem %s627_s1, %s337_s16 }
  0x16   :  { %v92_v0 = vld [vmem:[%s91_s22] sm:$0x1]  ;;  %s24_s26 = scalar_lea.vmem %s627_s1, %s325_s15  ;;  %s443_s14 = sld [smem:[#allocation4 + $0xe]] }
  0x17   :  { %94 = vrot.lane.b32.xlu1 %v92_v0, %s400_s30  ;;  %v25_v1 = vld [vmem:[%s24_s26] sm:$0x1]  ;;  %s59_s5 = scalar_lea.vmem %s627_s1, %s329_s17  ;;  %s155_s12 = scalar_lea.vmem %s627_s1, %s341_s0 }
  0x18   :  { %27 = vrot.lane.b32.xlu0 %v25_v1, %s400_s30  ;;  %v124_v2 = vld [vmem:[%s123_s29] sm:$0x1]  ;;  %s187_s8 = scalar_lea.vmem %s627_s1, %s345_s18  ;;  %s449_s18 = sld [smem:[#allocation4 + $0xa]] }
  0x19   :  { %v60_v3 = vld [vmem:[%s59_s5] sm:$0x1]  ;;  %s251_s17 = scalar_lea.vmem %s627_s1, %s353_s19  ;;  %s219_s0 = scalar_lea.vmem %s627_s1, %s349_s23 }
  0x1a   :  { %v188_v4 = vld [vmem:[%s187_s8] sm:$0x1]  ;;  %s455_s22 = sld [smem:[#allocation4 + $0x16]]  ;;  %s68_s26 = scalar_lea.vmem %s627_s1, %s330_s9 }
  0x1b   :  { %126 = vrot.lane.b32.xlu1 %v124_v2, %s400_s30  ;;  %v156_v5 = vld [vmem:[%s155_s12] sm:$0x1]  ;;  %s461_s19 = sld [smem:[#allocation4 + $0x12]]  ;;  %s34_s23 = scalar_lea.vmem %s627_s1, %s326_s13 }
  0x1c   :  { %62 = vrot.lane.b32.xlu0 %v60_v3, %s400_s30  ;;  %v252_v6 = vld [vmem:[%s251_s17] sm:$0x1]  ;;  %s132_s4 = scalar_lea.vmem %s627_s1, %s443_s14  ;;  %s471_s5 = sld [smem:[#allocation4 + $0x1e]] }
  0x1d   :  { %v220_v7 = vld [vmem:[%s219_s0] sm:$0x1]  ;;  %s474_s6 = sld [smem:[#allocation4 + $0x1a]]  ;;  %s476_s7 = sld [smem:[#allocation4 + $0x7]] }
  0x1e   :  { %v69_v8 = vld [vmem:[%s68_s26] sm:$0x1]  ;;  %s100_s10 = scalar_lea.vmem %s627_s1, %s449_s18  ;;  %s482_s11 = sld [smem:[#allocation4 + $0x3]] }
  0x1f   :  { %190 = vrot.lane.b32.xlu1 %v188_v4, %s400_s30  ;;  %v35_v9 = vld [vmem:[%s34_s23] sm:$0x1]  ;;  %s484_s12 = sld [smem:[#allocation4 + $0xf]]  ;;  %s486_s13 = sld [smem:[#allocation4 + $0xb]] }
  0x20   :  { %158 = vrot.lane.b32.xlu0 %v156_v5, %s400_s30  ;;  %s401_s14 = smov 64   ;;  %s196_s16 = scalar_lea.vmem %s627_s1, %s455_s22  ;;  %v133_v10 = vld [vmem:[%s132_s4] sm:$0x1] }
  0x21   :  { %s332_s17 = sld [smem:[#allocation4 + $0x8]]  ;;  %s336_s18 = sld [smem:[#allocation4 + $0xc]]  ;;  %v101_v11 = vld [vmem:[%s100_s10] sm:$0x1] }
  0x22   :  { %s17_s20 = sld [smem:[#allocation4]]  ;;  %s164_s24 = scalar_lea.vmem %s627_s1, %s461_s19  ;;  %v197_v12 = vld [vmem:[%s196_s16] sm:$0x1] }
  0x23   :  { %254 = vrot.lane.b32.xlu1 %v252_v6, %s400_s30  ;;  %s328_s25 = sld [smem:[#allocation4 + $0x4]]  ;;  %s500_s27 = sld [smem:[#allocation4 + $0x10]]  ;;  %v165_v13 = vld [vmem:[%s164_s24] sm:$0x1] }
  0x24   :  { %222 = vrot.lane.b32.xlu0 %v220_v7, %s400_s30  ;;  %s498_s26 = sld [smem:[#allocation4 + $0x14]]  ;;  %s503_s22 = sld [smem:[#allocation4 + $0x17]] }
  0x25   :  { %s505_s28 = sld [smem:[#allocation4 + $0x1c]]  ;;  %s260_s3 = scalar_lea.vmem %s627_s1, %s471_s5 }
  0x26   :  { %s512_s19 = sld [smem:[#allocation4 + $0x18]]  ;;  %s228_s9 = scalar_lea.vmem %s627_s1, %s474_s6  ;;  %v261_v17 = vld [vmem:[%s260_s3] sm:$0x1] }
  0x27   :  { %71 = vrot.lane.b32.xlu1 %v69_v8, %s401_s14  ;;  %s86_s15 = scalar_lea.vmem %s627_s1, %s332_s17  ;;  %s118_s24 = scalar_lea.vmem %s627_s1, %s336_s18  ;;  %v229_v19 = vld [vmem:[%s228_s9] sm:$0x1] }
  0x28   :  { %37 = vrot.lane.b32.xlu0 %v35_v9, %s401_s14  ;;  %v87_v14 = vld [vmem:[%s86_s15] sm:$0x1]  ;;  %s18_s0 = scalar_lea.vmem %s627_s1, %s17_s20  ;;  %s528_s29 = sld [smem:[#allocation4 + $0x13]] }
  0x29   :  { %88 = vst.msk [vmem:[#allocation2 + $0x2] sm:$0x1] %vm20_vm0, %v87_v14  ;;  %v19_v15 = vld [vmem:[%s18_s0] sm:$0x1]  ;;  %s54_s4 = scalar_lea.vmem %s627_s1, %s328_s25  ;;  %s150_s15 = scalar_lea.vmem %s627_s1, %s500_s27 }
  0x2a   :  { %v119_v16 = vld [vmem:[%s118_s24] sm:$0x1]  ;;  %21 = vst.msk [vmem:[#allocation2] sm:$0x1] %vm20_vm0, %v19_v15  ;;  %s182_s8 = scalar_lea.vmem %s627_s1, %s498_s26  ;;  %s77_s21 = scalar_lea.vmem %s627_s1, %s476_s7 }
  0x2b   :  { %135 = vrot.lane.b32.xlu1 %v133_v10, %s401_s14  ;;  %120 = vst.msk [vmem:[#allocation2 + $0x3] sm:$0x1] %vm20_vm0, %v119_v16  ;;  %v55_v18 = vld [vmem:[%s54_s4] sm:$0x1]  ;;  %s246_s5 = scalar_lea.vmem %s627_s1, %s505_s28  ;;  %s44_s24 = scalar_lea.vmem %s627_s1, %s482_s11 }
  0x2c   :  { %103 = vrot.lane.b32.xlu0 %v101_v11, %s401_s14  ;;  %56 = vst.msk [vmem:[#allocation2 + $0x1] sm:$0x1] %vm20_vm0, %v55_v18  ;;  %v183_v20 = vld [vmem:[%s182_s8] sm:$0x1]  ;;  %s214_s9 = scalar_lea.vmem %s627_s1, %s512_s19  ;;  %s141_s6 = scalar_lea.vmem %s627_s1, %s484_s12 }
  0x2d   :  { %v151_v21 = vld [vmem:[%s150_s15] sm:$0x1]  ;;  %184 = vst.msk [vmem:[#allocation2 + $0x5] sm:$0x1] %vm20_vm0, %v183_v20  ;;  %s355_s17 = sld [smem:[#allocation4 + $0x1f]]  ;;  %s109_s20 = scalar_lea.vmem %s627_s1, %s486_s13 }
  0x2e   :  { %152 = vst.msk [vmem:[#allocation2 + $0x4] sm:$0x1] %vm20_vm0, %v151_v21  ;;  %v247_v22 = vld [vmem:[%s246_s5] sm:$0x1]  ;;  %s351_s18 = sld [smem:[#allocation4 + $0x1b]]  ;;  %s402_s8 = smov 96  }
  0x2f   :  { %199 = vrot.lane.b32.xlu1 %v197_v12, %s401_s14  ;;  %248 = vst.msk [vmem:[#allocation2 + $0x7] sm:$0x1] %vm20_vm0, %v247_v22  ;;  %v215_v23 = vld [vmem:[%s214_s9] sm:$0x1]  ;;  %s205_s30 = scalar_lea.vmem %s627_s1, %s503_s22  ;;  %s173_s25 = scalar_lea.vmem %s627_s1, %s528_s29 }
  0x30   :  { %167 = vrot.lane.b32.xlu0 %v165_v13, %s401_s14  ;;  %v78_v24 = vld [vmem:[%s77_s21] sm:$0x1]  ;;  %216 = vst.msk [vmem:[#allocation2 + $0x6] sm:$0x1] %vm20_vm0, %v215_v23 }
  0x31   :  { %v45_v25 = vld [vmem:[%s44_s24] sm:$0x1] }
  0x32   :  { %v142_v26 = vld [vmem:[%s141_s6] sm:$0x1] }
  0x33   :  { %263 = vrot.lane.b32.xlu1 %v261_v17, %s401_s14  ;;  %v110_v27 = vld [vmem:[%s109_s20] sm:$0x1]  ;;  %s269_s21 = scalar_lea.vmem %s627_s1, %s355_s17 }
  0x34   :  { %231 = vrot.lane.b32.xlu0 %v229_v19, %s401_s14  ;;  %v206_v28 = vld [vmem:[%s205_s30] sm:$0x1]  ;;  %s237_s5 = scalar_lea.vmem %s627_s1, %s351_s18  ;;  %s403_s1 = smov [#allocation5]  }
  0x35   :  { %v174_v29 = vld [vmem:[%s173_s25] sm:$0x1]  ;;  %s285_s22 = sshll.u32 %s403_s1, 4  ;;  %s286_s22 = int_to_ptr.vmem [resolvable:$true] %s285_s22 }
  0x36   :  { %v270_v30 = vld [vmem:[%s269_s21] sm:$0x1]  ;;  %s373_s29 = scalar_lea.vmem %s286_s22, 128  ;;  %p378_p6 = scmp.lt.s32.totalorder %s286_s22, %s286_s22 }
  0x37   :  { %80 = vrot.lane.b32.xlu1 %v78_v24, %s402_s8  ;;  %v238_v31 = vld [vmem:[%s237_s5] sm:$0x1]  ;;  %p374_p5 = scmp.ne.s32.totalorder %s286_s22, %s373_s29  ;;  %p379_p7 = scmp.lt.s32.totalorder %s373_s29, %s373_s29 }
  0x38   :  { %47 = vrot.lane.b32.xlu0 %v45_v25, %s402_s8 }
  0x39   :  { %p380_p8 = por %p379_p7, %p378_p6 }
  0x3b   :  { %144 = vrot.lane.b32.xlu1 %v142_v26, %s402_s8  ;;  %p381_p9 = pnand %p380_p8, %p374_p5 }
  0x3c   :  { %112 = vrot.lane.b32.xlu0 %v110_v27, %s402_s8 }
  0x3f   :  { %208 = vrot.lane.b32.xlu1 %v206_v28, %s402_s8 }
  0x40   :  { %176 = vrot.lane.b32.xlu0 %v174_v29, %s402_s8 }
  0x43   :  { %272 = vrot.lane.b32.xlu1 %v270_v30, %s402_s8 }
  0x44   :  { %240 = vrot.lane.b32.xlu0 %v238_v31, %s402_s8 }
  0x89   :  { %v95_v32 = vpop.permute.xlu1 %94 }
  0x8a   :  { %97 = vst.msk [vmem:[#allocation2 + $0x2] sm:$0x1] %vm30_vm1, %v95_v32  ;;  %v28_v33 = vpop.permute.xlu0 %27 }
  0x8b   :  { %31 = vst.msk [vmem:[#allocation2] sm:$0x1] %vm30_vm1, %v28_v33 }
  0x8d   :  { %v127_v34 = vpop.permute.xlu1 %126 }
  0x8e   :  { %129 = vst.msk [vmem:[#allocation2 + $0x3] sm:$0x1] %vm30_vm1, %v127_v34  ;;  %v63_v35 = vpop.permute.xlu0 %62 }
  0x8f   :  { %65 = vst.msk [vmem:[#allocation2 + $0x1] sm:$0x1] %vm30_vm1, %v63_v35 }
  0x91   :  { %v191_v36 = vpop.permute.xlu1 %190 }
  0x92   :  { %193 = vst.msk [vmem:[#allocation2 + $0x5] sm:$0x1] %vm30_vm1, %v191_v36  ;;  %v159_v37 = vpop.permute.xlu0 %158 }
  0x93   :  { %161 = vst.msk [vmem:[#allocation2 + $0x4] sm:$0x1] %vm30_vm1, %v159_v37 }
  0x95   :  { %v255_v38 = vpop.permute.xlu1 %254 }
  0x96   :  { %257 = vst.msk [vmem:[#allocation2 + $0x7] sm:$0x1] %vm30_vm1, %v255_v38  ;;  %v223_v39 = vpop.permute.xlu0 %222 }
  0x97   :  { %225 = vst.msk [vmem:[#allocation2 + $0x6] sm:$0x1] %vm30_vm1, %v223_v39 }
  0x99   :  { %v72_v40 = vpop.permute.xlu1 %71 }
  0x9a   :  { %74 = vst.msk [vmem:[#allocation2 + $0x1] sm:$0x1] %vm40_vm2, %v72_v40  ;;  %v38_v41 = vpop.permute.xlu0 %37 }
  0x9b   :  { %41 = vst.msk [vmem:[#allocation2] sm:$0x1] %vm40_vm2, %v38_v41 }
  0x9d   :  { %v136_v42 = vpop.permute.xlu1 %135 }
  0x9e   :  { %138 = vst.msk [vmem:[#allocation2 + $0x3] sm:$0x1] %vm40_vm2, %v136_v42  ;;  %v104_v43 = vpop.permute.xlu0 %103 }
  0x9f   :  { %106 = vst.msk [vmem:[#allocation2 + $0x2] sm:$0x1] %vm40_vm2, %v104_v43 }
  0xa1   :  { %v200_v44 = vpop.permute.xlu1 %199 }
  0xa2   :  { %202 = vst.msk [vmem:[#allocation2 + $0x5] sm:$0x1] %vm40_vm2, %v200_v44  ;;  %v168_v45 = vpop.permute.xlu0 %167 }
  0xa3   :  { %170 = vst.msk [vmem:[#allocation2 + $0x4] sm:$0x1] %vm40_vm2, %v168_v45 }
  0xa5   :  { %v264_v46 = vpop.permute.xlu1 %263 }
  0xa6   :  { %266 = vst.msk [vmem:[#allocation2 + $0x7] sm:$0x1] %vm40_vm2, %v264_v46  ;;  %v232_v47 = vpop.permute.xlu0 %231 }
  0xa7   :  { %234 = vst.msk [vmem:[#allocation2 + $0x6] sm:$0x1] %vm40_vm2, %v232_v47 }
  0xa9   :  { %v81_v48 = vpop.permute.xlu1 %80 }
  0xaa   :  { %83 = vst.msk [vmem:[#allocation2 + $0x1] sm:$0x1] %vm50_vm3, %v81_v48  ;;  %v48_v49 = vpop.permute.xlu0 %47 }
  0xab   :  { %51 = vst.msk [vmem:[#allocation2] sm:$0x1] %vm50_vm3, %v48_v49 }
  0xad   :  { %v145_v50 = vpop.permute.xlu1 %144 }
  0xae   :  { %147 = vst.msk [vmem:[#allocation2 + $0x3] sm:$0x1] %vm50_vm3, %v145_v50  ;;  %v113_v51 = vpop.permute.xlu0 %112 }
  0xaf   :  { %115 = vst.msk [vmem:[#allocation2 + $0x2] sm:$0x1] %vm50_vm3, %v113_v51 }
  0xb1   :  { %v209_v52 = vpop.permute.xlu1 %208 }
  0xb2   :  { %211 = vst.msk [vmem:[#allocation2 + $0x5] sm:$0x1] %vm50_vm3, %v209_v52  ;;  %v177_v53 = vpop.permute.xlu0 %176 }
  0xb3   :  { %179 = vst.msk [vmem:[#allocation2 + $0x4] sm:$0x1] %vm50_vm3, %v177_v53 }
  0xb5   :  { %v273_v54 = vpop.permute.xlu1 %272 }
  0xb6   :  { %275 = vst.msk [vmem:[#allocation2 + $0x7] sm:$0x1] %vm50_vm3, %v273_v54  ;;  %v241_v55 = vpop.permute.xlu0 %240 }
  0xb7   :  { %243 = vst.msk [vmem:[#allocation2 + $0x6] sm:$0x1] %vm50_vm3, %v241_v55 }
  0xbe   :  { %v276_v56 = vld [vmem:[#allocation2] sm:$0xff] }
  0xbf   :  { %v277_v57 = vmul.f32 5.656854, %v276_v56 }
  0xc1   :  { %278 = vst [vmem:[#allocation5] sm:$0xff] %v277_v57 }
  0xc2   :  { %384 = shalt.err (!%p381_p9)
}
  0xc3   :  { %s385_s24 = scalar_lea.hbm %s628_s2, 128 }
  0xc4   :  { %p386_p10 = scmp.ne.s32.totalorder %s628_s2, %s385_s24  ;;  %p389_p11 = scmp.lt.u32.totalorder %s385_s24, %s628_s2 }
  0xc6   :  { %p391_p12 = pnand %p389_p11, %p386_p10 }
  0xc8   :  { %394 = shalt.err (!%p391_p12)
}
  0xc9   :  { %288 = dma.vmem_to_hbm [thread:$0]  %s286_s22, 128, %s628_s2, [#allocation6]  }
  0xca   :  { %397 = dma.done.wait [#allocation6], 128  }
  0xcb   :  { %398 = vsyncadd [#allocation6], 4294967168 }
  0xcc   :  { %292 = vsyncpa [#allocation6], 1 }

</bundles_post_ra>
